<compile_context>
chip_gen: v7x
topology: tpu7x:2x2x1
jax: 0.10.0
libtpu: 0.0.40
codegen_flags: <defaults>
</compile_context>

<pallas_src>
import functools

import jax
import jax.numpy as jnp
from jax.experimental import pallas as pl
from jax.experimental.pallas import tpu as pltpu

_LANE = 128
_VMEM_LIMIT = 48 * 1024 * 1024      # headroom under v7x's 64 MiB per-TC VMEM


def _round_up(x, m):
    return (x + m - 1) // m * m


def _pick_tile(n_pad, cap=512):
    """Largest tile in {512,384,256,128} dividing n_pad (n_pad is a mult of 128)."""
    for t in (512, 384, 256, 128):
        if t <= cap and n_pad % t == 0:
            return t
    return n_pad


def _pad2d(a, rows, cols, dtype):
    a = a.astype(dtype)
    return jnp.pad(a, ((0, rows - a.shape[0]), (0, cols - a.shape[1])))


# ------------------------------------------------------------------ kernels --

def _gcn_prep_kernel(adj_ref, x_ref, w_ref, dinv_ref, xs_ref, deg_acc,
                     *, pre_w, add_self_loops):
    """Row-tile degree reduction + dinv prescaling of the feature matrix.

    grid = (row tiles, column/contraction tiles).  At the last column tile the
    row degree is complete, so we emit dinv and xs = dinv * feat, where feat is
    x (W applied later) or x @ W (folded here when F_out < F_in).
    """
    k = pl.program_id(1)

    @pl.when(k == 0)
    def _init():
        deg_acc[...] = jnp.zeros_like(deg_acc)

    deg_acc[...] += jnp.sum(adj_ref[...].astype(jnp.float32), axis=1,
                            keepdims=True)

    @pl.when(k == pl.num_programs(1) - 1)
    def _finish():
        deg = deg_acc[...]
        if add_self_loops:
            dinv = jax.lax.rsqrt(deg + 1.0)          # deg >= 1: no isinf guard
        else:
            dinv = jnp.where(deg > 0.0, jax.lax.rsqrt(deg), 0.0)
        dinv_ref[...] = dinv
        feat = x_ref[...]
        if pre_w:                                    # F_out < F_in: fold W once
            feat = jnp.dot(feat, w_ref[...],
                           preferred_element_type=jnp.float32)
        xs_ref[...] = (feat * dinv).astype(xs_ref.dtype)


def _gcn_conv_kernel(adj_ref, xs_ref, dinv_ref, w_ref, b_ref, out_ref, acc_ref,
                     *, tm, tk, post_w, add_self_loops, mxu_dtype):
    """out_row_tile = dinv * (A @ xs + xs_row) [@ W] + b, tiled over (rows, k)."""
    i = pl.program_id(0)
    k = pl.program_id(1)

    @pl.when(k == 0)
    def _init():
        acc_ref[...] = jnp.zeros_like(acc_ref)

    koff = pl.multiple_of(k * tk, tk)
    xs_k = xs_ref[pl.ds(koff, tk), :]                # xs is VMEM-resident
    acc_ref[...] += jnp.dot(adj_ref[...].astype(mxu_dtype),
                            xs_k.astype(mxu_dtype),
                            preferred_element_type=jnp.float32)

    @pl.when(k == pl.num_programs(1) - 1)
    def _finish():
        agg = acc_ref[...]
        if add_self_loops:                           # self loop == + dinv^2 * feat
            ioff = pl.multiple_of(i * tm, tm)
            agg = agg + xs_ref[pl.ds(ioff, tm), :].astype(jnp.float32)
        agg = agg * dinv_ref[...]
        if post_w:                                   # F_in <= F_out: apply W now
            agg = jnp.dot(agg.astype(w_ref.dtype), w_ref[...],
                          preferred_element_type=jnp.float32)
        out_ref[...] = (agg + b_ref[...]).astype(out_ref.dtype)


# ------------------------------------------------------------------ wrapper --

def gcn_conv_forward(x, adj, weight, bias=None, *, add_self_loops=True,
                     use_bf16=False):
    """GCNConv.forward (normalize=True) on a dense [N, N] adjacency."""
    n, f_in = x.shape
    f_out = weight.shape[1]
    assert adj.shape == (n, n)

    post_w = f_in <= f_out           # contract the N^2 matmul vs the smaller dim
    f32 = jnp.float32
    mxu_dtype = jnp.bfloat16 if use_bf16 else f32

    n_pad = _round_up(n, _LANE)
    f_in_pad = _round_up(f_in, _LANE)
    f_out_pad = _round_up(f_out, _LANE)
    f_feat_pad = f_in_pad if post_w else f_out_pad

    tm = _pick_tile(n_pad)
    tk = _pick_tile(n_pad)
    grid = (n_pad // tm, n_pad // tk)

    # Zero padding keeps the math exact: padded rows/cols contribute nothing
    # and padded output rows/cols are sliced off at the end.
    adj_p = _pad2d(adj, n_pad, n_pad, mxu_dtype)     # {0,1} exact in bf16 too
    x_p = _pad2d(x, n_pad, f_in_pad, f32)
    w_p = _pad2d(weight, f_in_pad, f_out_pad, f32)
    if bias is None:
        b_p = jnp.zeros((1, f_out_pad), f32)
    else:
        b_p = _pad2d(bias.reshape(1, f_out), 1, f_out_pad, f32)

    cparams = pltpu.CompilerParams(
        dimension_semantics=("parallel", "arbitrary"),
        vmem_limit_bytes=_VMEM_LIMIT)

    # ---- pass 1: degrees -> dinv, and dinv-prescaled features --------------
    dinv, xs = pl.pallas_call(
        functools.partial(_gcn_prep_kernel, pre_w=not post_w,
                          add_self_loops=add_self_loops),
        grid=grid,
        in_specs=[
            pl.BlockSpec((tm, tk), lambda i, k: (i, k)),               # A tile
            pl.BlockSpec((tm, f_in_pad), lambda i, k: (i, 0)),         # x rows
            pl.BlockSpec((f_in_pad, f_out_pad), lambda i, k: (0, 0)),  # W
        ],
        out_specs=[
            pl.BlockSpec((tm, 1), lambda i, k: (i, 0)),                # dinv
            pl.BlockSpec((tm, f_feat_pad), lambda i, k: (i, 0)),       # xs
        ],
        out_shape=[
            jax.ShapeDtypeStruct((n_pad, 1), f32),
            jax.ShapeDtypeStruct((n_pad, f_feat_pad),
                                 jnp.bfloat16 if use_bf16 else f32),
        ],
        scratch_shapes=[pltpu.VMEM((tm, 1), f32)],
        compiler_params=cparams,
    )(adj_p, x_p, w_p)

    # ---- pass 2: tiled aggregation + (optional) W post-multiply + bias -----
    flops = 2 * n_pad * n_pad * f_feat_pad
    if post_w:
        flops += 2 * n_pad * f_feat_pad * f_out_pad
    bytes_accessed = (adj_p.size * adj_p.dtype.itemsize
                      + xs.size * xs.dtype.itemsize
                      + (w_p.size + b_p.size + n_pad) * 4
                      + n_pad * f_out_pad * 4)

    out = pl.pallas_call(
        functools.partial(_gcn_conv_kernel, tm=tm, tk=tk, post_w=post_w,
                          add_self_loops=add_self_loops, mxu_dtype=mxu_dtype),
        grid=grid,
        in_specs=[
            pl.BlockSpec((tm, tk), lambda i, k: (i, k)),               # A tile
            pl.BlockSpec((n_pad, f_feat_pad), lambda i, k: (0, 0)),    # xs (resident)
            pl.BlockSpec((tm, 1), lambda i, k: (i, 0)),                # dinv rows
            pl.BlockSpec((f_in_pad, f_out_pad), lambda i, k: (0, 0)),  # W
            pl.BlockSpec((1, f_out_pad), lambda i, k: (0, 0)),         # bias
        ],
        out_specs=pl.BlockSpec((tm, f_out_pad), lambda i, k: (i, 0)),
        out_shape=jax.ShapeDtypeStruct((n_pad, f_out_pad), x.dtype),
        scratch_shapes=[pltpu.VMEM((tm, f_feat_pad), f32)],
        compiler_params=cparams,
        cost_estimate=pl.CostEstimate(flops=flops, transcendentals=0,
                                      bytes_accessed=bytes_accessed),
    )(adj_p, xs, dinv, w_p, b_p)

    return out[:n, :f_out]


# ---------------------------------------------------------------- reference --

def gcn_conv_reference(x, adj, weight, bias=None, add_self_loops=True):
    n = adj.shape[0]
    a = adj.astype(jnp.float32)
    if add_self_loops:
        a = a + jnp.eye(n, dtype=jnp.float32)
    deg = a.sum(axis=1)
    dinv = deg ** -0.5
    dinv = jnp.where(jnp.isinf(dinv), 0.0, dinv)
    a = a * dinv[:, None] * dinv[None, :]
    out = a @ (x @ weight)
    if bias is not None:
        out = out + bias
    return out


# --------------------------------------------------------------------- main --

if __name__ == "__main__":
    key = jax.random.PRNGKey(0)
    k_adj, k_x, k_w, k_w2 = jax.random.split(key, 4)

    n_nodes = 64
    in_channels = 16
    out_channels = 32

    # dense binary adjacency (what edge_index.to_dense() produces)
    adj = (jax.random.uniform(k_adj, (n_nodes, n_nodes)) < 0.1).astype(jnp.float32)
    x = jax.random.normal(k_x, (n_nodes, in_channels), dtype=jnp.float32)

    # xavier_uniform_ weight init, zero bias (matches reset_parameters)
    bound = (6.0 / (in_channels + out_channels)) ** 0.5
    weight = jax.random.uniform(k_w, (in_channels, out_channels),
                                minval=-bound, maxval=bound, dtype=jnp.float32)
    bias = jnp.zeros((out_channels,), dtype=jnp.float32)

    out = jax.block_until_ready(gcn_conv_forward(x, adj, weight, bias))
    ref = gcn_conv_reference(x, adj, weight, bias)
    assert out.shape == (n_nodes, out_channels)
    assert jnp.allclose(out, ref, atol=1e-4, rtol=1e-4), "mismatch (F_in <= F_out)"

    # also exercise the F_out < F_in order (x @ W folded into the prep kernel)
    weight2 = jax.random.uniform(k_w2, (out_channels, in_channels),
                                 minval=-bound, maxval=bound, dtype=jnp.float32)
    x2 = jax.random.normal(k_x, (n_nodes, out_channels), dtype=jnp.float32)
    bias2 = jnp.zeros((in_channels,), dtype=jnp.float32)
    out2 = jax.block_until_ready(gcn_conv_forward(x2, adj, weight2, bias2))
    ref2 = gcn_conv_reference(x2, adj, weight2, bias2)
    assert jnp.allclose(out2, ref2, atol=1e-4, rtol=1e-4), "mismatch (F_out < F_in)"

    print("KERNEL_OK")
</pallas_src>

<mosaic_0001>
module attributes {stable_mosaic.version = 11 : i64} {
  func.func @_gcn_prep_kernel(%arg0: i32, %arg1: i32, %arg2: memref<128x128xf32, #tpu.memory_space<vmem>>, %arg3: memref<128x128xf32, #tpu.memory_space<vmem>>, %arg4: memref<128x128xf32, #tpu.memory_space<vmem>>, %arg5: memref<128x1xf32, #tpu.memory_space<vmem>>, %arg6: memref<128x128xf32, #tpu.memory_space<vmem>>, %arg7: memref<128x1xf32, #tpu.memory_space<vmem>>) attributes {dimension_semantics = [#tpu.dimension_semantics<parallel>, #tpu.dimension_semantics<arbitrary>], iteration_bounds = array<i64: 1, 1>, scalar_prefetch = 0 : i64, scratch_operands = 1 : i64, tpu.core_type = #tpu.core_type<tc>, window_params = [{transform_indices = @transform_0, window_bounds = array<i64: 128, 128>}, {transform_indices = @transform_1, window_bounds = array<i64: 128, 128>}, {pipeline_mode = #tpu.pipeline_mode<synchronous>, transform_indices = @transform_2, window_bounds = array<i64: 128, 128>}, {transform_indices = @transform_3, window_bounds = array<i64: 128, 1>}, {transform_indices = @transform_4, window_bounds = array<i64: 128, 128>}]} {
    %c0_i32 = arith.constant 0 : i32
    %0 = arith.cmpi eq, %arg1, %c0_i32 : i32
    %1 = arith.extui %0 : i1 to i32
    %c0_i32_0 = arith.constant 0 : i32
    %2 = arith.cmpi ne, %1, %c0_i32_0 : i32
    scf.if %2 {
      %cst_8 = arith.constant 0.000000e+00 : f32
      %12 = vector.broadcast %cst_8 : f32 to vector<128x1xf32>
      %c0_9 = arith.constant 0 : index
      %c0_10 = arith.constant 0 : index
      %13 = vector.load %arg7[%c0_9, %c0_10] : memref<128x1xf32, #tpu.memory_space<vmem>>, vector<128x1xf32>
      tpu.vector_store %arg7[%c0_9, %c0_10], %12 {strides = array<i32>} : memref<128x1xf32, #tpu.memory_space<vmem>>, vector<128x1xf32>,
    } else {
    }
    %c0 = arith.constant 0 : index
    %c0_1 = arith.constant 0 : index
    %3 = vector.load %arg7[%c0, %c0_1] : memref<128x1xf32, #tpu.memory_space<vmem>>, vector<128x1xf32>
    %c0_2 = arith.constant 0 : index
    %c0_3 = arith.constant 0 : index
    %4 = vector.load %arg2[%c0_2, %c0_3] : memref<128x128xf32, #tpu.memory_space<vmem>>, vector<128x128xf32>
    %cst = arith.constant dense<0.000000e+00> : vector<128xf32>
    %5 = vector.multi_reduction <add>, %4, %cst [1] : vector<128x128xf32> to vector<128xf32>
    %6 = vector.shape_cast %5 : vector<128xf32> to vector<128x1xf32>
    %7 = arith.addf %3, %6 : vector<128x1xf32>
    %c0_4 = arith.constant 0 : index
    %c0_5 = arith.constant 0 : index
    %8 = vector.load %arg7[%c0_4, %c0_5] : memref<128x1xf32, #tpu.memory_space<vmem>>, vector<128x1xf32>
    tpu.vector_store %arg7[%c0_4, %c0_5], %7 {strides = array<i32>} : memref<128x1xf32, #tpu.memory_space<vmem>>, vector<128x1xf32>,
    %c0_i32_6 = arith.constant 0 : i32
    %9 = arith.cmpi eq, %arg1, %c0_i32_6 : i32
    %10 = arith.extui %9 : i1 to i32
    %c0_i32_7 = arith.constant 0 : i32
    %11 = arith.cmpi ne, %10, %c0_i32_7 : i32
    scf.if %11 {
      %c0_8 = arith.constant 0 : index
      %c0_9 = arith.constant 0 : index
      %12 = vector.load %arg7[%c0_8, %c0_9] : memref<128x1xf32, #tpu.memory_space<vmem>>, vector<128x1xf32>
      %cst_10 = arith.constant 1.000000e+00 : f32
      %13 = vector.broadcast %cst_10 : f32 to vector<128x1xf32>
      %14 = arith.addf %12, %13 : vector<128x1xf32>
      %15 = math.rsqrt %14 : vector<128x1xf32>
      %c0_11 = arith.constant 0 : index
      %c0_12 = arith.constant 0 : index
      %16 = vector.load %arg5[%c0_11, %c0_12] : memref<128x1xf32, #tpu.memory_space<vmem>>, vector<128x1xf32>
      tpu.vector_store %arg5[%c0_11, %c0_12], %15 {strides = array<i32>} : memref<128x1xf32, #tpu.memory_space<vmem>>, vector<128x1xf32>,
      %c0_13 = arith.constant 0 : index
      %c0_14 = arith.constant 0 : index
      %17 = vector.load %arg3[%c0_13, %c0_14] : memref<128x128xf32, #tpu.memory_space<vmem>>, vector<128x128xf32>
      %18 = vector.broadcast %15 : vector<128x1xf32> to vector<128x128xf32>
      %19 = arith.mulf %17, %18 : vector<128x128xf32>
      %c0_15 = arith.constant 0 : index
      %c0_16 = arith.constant 0 : index
      %20 = vector.load %arg6[%c0_15, %c0_16] : memref<128x128xf32, #tpu.memory_space<vmem>>, vector<128x128xf32>
      tpu.vector_store %arg6[%c0_15, %c0_16], %19 {strides = array<i32>} : memref<128x128xf32, #tpu.memory_space<vmem>>, vector<128x128xf32>,
    } else {
    }
    return
  }
  func.func @transform_0(%arg0: i32, %arg1: i32) -> (i32, i32) {
    %c0_i32 = arith.constant 0 : i32
    return %arg0, %arg1 : i32, i32
  }
  func.func @transform_1(%arg0: i32, %arg1: i32) -> (i32, i32) {
    %c0_i32 = arith.constant 0 : i32
    %c0_i32_0 = arith.constant 0 : i32
    return %arg0, %c0_i32 : i32, i32
  }
  func.func @transform_2(%arg0: i32, %arg1: i32) -> (i32, i32) {
    %c0_i32 = arith.constant 0 : i32
    %c0_i32_0 = arith.constant 0 : i32
    %c0_i32_1 = arith.constant 0 : i32
    return %c0_i32, %c0_i32_0 : i32, i32
  }
  func.func @transform_3(%arg0: i32, %arg1: i32) -> (i32, i32) {
    %c0_i32 = arith.constant 0 : i32
    %c0_i32_0 = arith.constant 0 : i32
    return %arg0, %c0_i32 : i32, i32
  }
  func.func @transform_4(%arg0: i32, %arg1: i32) -> (i32, i32) {
    %c0_i32 = arith.constant 0 : i32
    %c0_i32_0 = arith.constant 0 : i32
    return %arg0, %c0_i32 : i32, i32
  }
}

</mosaic_0001>

<bundles_post_ra>
// kernel: tpu_custom_call.1
= control target key start
LH: loop header
LB: loop body
LE: loop exit
PB: predicated region body
PF: predicated region fallthrough
CT: control target
= control target key end

     0   :  { %10 = vsyncpa [#allocation4], 0  ;;  %s725_s0 = inlined_call_operand.hbm [shape: f32[128,128], index: 0, kind: input, shape index: {}]   ;;  %s726_s1 = inlined_call_operand.hbm [shape: f32[128,128], index: 1, kind: input, shape index: {}]   ;;  %s727_s2 = inlined_call_operand.hbm [shape: f32[128,128], index: 2, kind: input, shape index: {}]   ;;  %s728_s3 = inlined_call_operand.vmem [shape: f32[128,1], index: 3, kind: output, shape index: {0}]   ;;  %s729_s4 = inlined_call_operand.hbm [shape: f32[128,128], index: 4, kind: output, shape index: {1}]  }
   0x1   :  { %11 = vsyncpa [#allocation7], 0 }
   0x2   :  { %12 = vsyncpa [#allocation5], 0  ;;  %s529_s15 = smov [#allocation6]   ;;  %s530_s17 = smov [#allocation3]  }
   0x3   :  { %s30_s16 = sshll.u32 %s529_s15, 4  ;;  %s18_s18 = sshll.u32 %s530_s17, 4  ;;  %s31_s16 = int_to_ptr.vmem [resolvable:$true] %s30_s16  ;;  %s562_s18 = int_to_ptr.vmem [resolvable:$true] %s18_s18 }
   0x4   :  { %s435_s21 = scalar_lea.hbm %s726_s1, 2048 }
   0x5   :  { %p436_p0 = scmp.ne.s32.totalorder %s726_s1, %s435_s21  ;;  %p439_p1 = scmp.lt.u32.totalorder %s435_s21, %s726_s1 }
   0x7   :  { %p441_p2 = pnand %p439_p1, %p436_p0 }
   0x9   :  { %444 = shalt.err (!%p441_p2)
}
   0xa   :  { %s445_s26 = scalar_lea.vmem %s31_s16, 2048  ;;  %p450_p4 = scmp.lt.s32.totalorder %s31_s16, %s31_s16 }
   0xb   :  { %p446_p3 = scmp.ne.s32.totalorder %s31_s16, %s445_s26  ;;  %p451_p5 = scmp.lt.s32.totalorder %s445_s26, %s445_s26 }
   0xd   :  { %p452_p6 = por %p451_p5, %p450_p4 }
   0xf   :  { %p453_p7 = pnand %p452_p6, %p446_p3 }
  0x11   :  { %456 = shalt.err (!%p453_p7)
}
  0x12   :  { %s531_s27 = smov 128   ;;  %s532_s28 = smov 8  }
  0x13   :  { %36 = dma.hbm_to_vmem [thread:$0]  %s726_s1, 2048, %s31_s16, [#allocation7], %s531_s27, %s531_s27, %s532_s28  }
  0x14   :  { %s457_s7 = scalar_lea.hbm %s725_s0, 2048 }
  0x15   :  { %p458_p8 = scmp.ne.s32.totalorder %s725_s0, %s457_s7  ;;  %p461_p9 = scmp.lt.u32.totalorder %s457_s7, %s725_s0 }
  0x17   :  { %p463_p10 = pnand %p461_p9, %p458_p8 }
  0x19   :  { %466 = shalt.err (!%p463_p10)
}
  0x1a   :  { %s467_s12 = scalar_lea.vmem %s562_s18, 2048  ;;  %p472_p12 = scmp.lt.s32.totalorder %s562_s18, %s562_s18 }
  0x1b   :  { %p468_p11 = scmp.ne.s32.totalorder %s562_s18, %s467_s12  ;;  %p473_p13 = scmp.lt.s32.totalorder %s467_s12, %s467_s12 }
  0x1d   :  { %p474_p0 = por %p473_p13, %p472_p12 }
  0x1f   :  { %p475_p1 = pnand %p474_p0, %p468_p11 }
  0x21   :  { %478 = shalt.err (!%p475_p1)
}
  0x22   :  { %24 = dma.hbm_to_vmem [thread:$0]  %s725_s0, 2048, %s562_s18, [#allocation4], %s531_s27, %s531_s27, %s532_s28  }
  0x23   :  { %s533_s14 = smov [#allocation8]   ;;  %s479_s19 = scalar_lea.hbm %s727_s2, 2048 }
  0x24   :  { %s42_s15 = sshll.u32 %s533_s14, 4  ;;  %p480_p2 = scmp.ne.s32.totalorder %s727_s2, %s479_s19  ;;  %s43_s15 = int_to_ptr.vmem [resolvable:$true] %s42_s15 }
  0x25   :  { %p483_p3 = scmp.lt.u32.totalorder %s479_s19, %s727_s2 }
  0x27   :  { %p485_p4 = pnand %p483_p3, %p480_p2 }
  0x29   :  { %488 = shalt.err (!%p485_p4)
}
  0x2a   :  { %s489_s24 = scalar_lea.vmem %s43_s15, 2048  ;;  %p494_p6 = scmp.lt.s32.totalorder %s43_s15, %s43_s15 }
  0x2b   :  { %p490_p5 = scmp.ne.s32.totalorder %s43_s15, %s489_s24  ;;  %p495_p7 = scmp.lt.s32.totalorder %s489_s24, %s489_s24 }
  0x2d   :  { %p496_p8 = por %p495_p7, %p494_p6 }
  0x2f   :  { %p497_p9 = pnand %p496_p8, %p490_p5 }
  0x31   :  { %500 = shalt.err (!%p497_p9)
}
  0x32   :  { %48 = dma.hbm_to_vmem [thread:$0]  %s727_s2, 2048, %s43_s15, [#allocation7], %s531_s27, %s531_s27, %s532_s28  }
  0x33   :  { %523 = dma.done.wait [#allocation4], 2048  }
  0x34   :  { %524 = vsyncadd [#allocation4], 4294965248 }
  0x35   :  { %525 = dma.done.wait [#allocation7], 4096  }
  0x36   :  { %526 = vsyncadd [#allocation7], 4294963200  ;;  %vm62_vm0 = vcmask 7168   ;;  %v534_v0 = vmov 0.0   ;;  %v97_v1 = vld [vmem:[#allocation3 + $0x10] sm:$0xff]  ;;  %v95_v2 = vld [vmem:[#allocation3] sm:$0xff] }
  0x37   :  { %65 = vst.msk [vmem:[#allocation2 + $0x10] sm:$0xff] %vm62_vm0, %v534_v0  ;;  %63 = vst.msk [vmem:[#allocation2] sm:$0xff] %vm62_vm0, %v534_v0  ;;  %115 = vadd.xlane.f32.xlu1 %v97_v1  ;;  %111 = vadd.xlane.f32.xlu0 %v95_v2  ;;  %v98_v3 = vld [vmem:[#allocation3 + $0x18] sm:$0xff]  ;;  %v96_v4 = vld [vmem:[#allocation3 + $0x8] sm:$0xff]  ;;  %v535_v17 = vmov 0  }
  0x38   :  { %64 = vst.msk [vmem:[#allocation2 + $0x8] sm:$0xff] %vm62_vm0, %v534_v0  ;;  %66 = vst.msk [vmem:[#allocation2 + $0x18] sm:$0xff] %vm62_vm0, %v534_v0  ;;  %v100_v5 = vld [vmem:[#allocation3 + $0x28] sm:$0xff]  ;;  %v99_v6 = vld [vmem:[#allocation3 + $0x20] sm:$0xff]  ;;  %401 = vset.pattern.permute.xlu0 %v535_v17  ;;  %402 = vset.pattern.permute.xlu1 %v535_v17 }
  0x39   :  { %67 = vst.msk [vmem:[#allocation2 + $0x20] sm:$0xff] %vm62_vm0, %v534_v0  ;;  %68 = vst.msk [vmem:[#allocation2 + $0x28] sm:$0xff] %vm62_vm0, %v534_v0  ;;  %v102_v7 = vld [vmem:[#allocation3 + $0x38] sm:$0xff]  ;;  %v101_v8 = vld [vmem:[#allocation3 + $0x30] sm:$0xff] }
  0x3a   :  { %69 = vst.msk [vmem:[#allocation2 + $0x30] sm:$0xff] %vm62_vm0, %v534_v0  ;;  %70 = vst.msk [vmem:[#allocation2 + $0x38] sm:$0xff] %vm62_vm0, %v534_v0  ;;  %v104_v9 = vld [vmem:[#allocation3 + $0x48] sm:$0xff]  ;;  %v103_v10 = vld [vmem:[#allocation3 + $0x40] sm:$0xff] }
  0x3b   :  { %71 = vst.msk [vmem:[#allocation2 + $0x40] sm:$0xff] %vm62_vm0, %v534_v0  ;;  %72 = vst.msk [vmem:[#allocation2 + $0x48] sm:$0xff] %vm62_vm0, %v534_v0  ;;  %117 = vadd.xlane.f32.xlu1 %v98_v3  ;;  %113 = vadd.xlane.f32.xlu0 %v96_v4  ;;  %v106_v11 = vld [vmem:[#allocation3 + $0x58] sm:$0xff]  ;;  %v105_v12 = vld [vmem:[#allocation3 + $0x50] sm:$0xff] }
  0x3c   :  { %73 = vst.msk [vmem:[#allocation2 + $0x50] sm:$0xff] %vm62_vm0, %v534_v0  ;;  %74 = vst.msk [vmem:[#allocation2 + $0x58] sm:$0xff] %vm62_vm0, %v534_v0  ;;  %v108_v13 = vld [vmem:[#allocation3 + $0x68] sm:$0xff]  ;;  %v107_v14 = vld [vmem:[#allocation3 + $0x60] sm:$0xff] }
  0x3d   :  { %75 = vst.msk [vmem:[#allocation2 + $0x60] sm:$0xff] %vm62_vm0, %v534_v0  ;;  %76 = vst.msk [vmem:[#allocation2 + $0x68] sm:$0xff] %vm62_vm0, %v534_v0  ;;  %v110_v15 = vld [vmem:[#allocation3 + $0x78] sm:$0xff]  ;;  %v109_v16 = vld [vmem:[#allocation3 + $0x70] sm:$0xff] }
  0x3e   :  { %77 = vst.msk [vmem:[#allocation2 + $0x70] sm:$0xff] %vm62_vm0, %v534_v0  ;;  %78 = vst.msk [vmem:[#allocation2 + $0x78] sm:$0xff] %vm62_vm0, %v534_v0  ;;  %v81_v18 = vld [vmem:[#allocation2 + $0x10] sm:$0xff]  ;;  %v79_v19 = vld [vmem:[#allocation2] sm:$0xff] }
  0x3f   :  { %121 = vadd.xlane.f32.xlu1 %v100_v5  ;;  %119 = vadd.xlane.f32.xlu0 %v99_v6  ;;  %v82_v24 = vld [vmem:[#allocation2 + $0x18] sm:$0xff]  ;;  %v80_v25 = vld [vmem:[#allocation2 + $0x8] sm:$0xff] }
  0x40   :  { %v84_v30 = vld [vmem:[#allocation2 + $0x28] sm:$0xff]  ;;  %v83_v31 = vld [vmem:[#allocation2 + $0x20] sm:$0xff] }
  0x41   :  { %v86_v35 = vld [vmem:[#allocation2 + $0x38] sm:$0xff]  ;;  %v85_v37 = vld [vmem:[#allocation2 + $0x30] sm:$0xff] }
  0x42   :  { %v88_v45 = vld [vmem:[#allocation2 + $0x48] sm:$0xff]  ;;  %v87_v48 = vld [vmem:[#allocation2 + $0x40] sm:$0xff] }
  0x43   :  { %125 = vadd.xlane.f32.xlu1 %v102_v7  ;;  %123 = vadd.xlane.f32.xlu0 %v101_v8  ;;  %v90_v55 = vld [vmem:[#allocation2 + $0x58] sm:$0xff]  ;;  %v89_v57 = vld [vmem:[#allocation2 + $0x50] sm:$0xff] }
  0x44   :  { %v92_v1 = vld [vmem:[#allocation2 + $0x68] sm:$0xff]  ;;  %v91_v3 = vld [vmem:[#allocation2 + $0x60] sm:$0xff] }
  0x47   :  { %129 = vadd.xlane.f32.xlu1 %v104_v9  ;;  %127 = vadd.xlane.f32.xlu0 %v103_v10 }
  0x4b   :  { %133 = vadd.xlane.f32.xlu1 %v106_v11  ;;  %131 = vadd.xlane.f32.xlu0 %v105_v12 }
  0x4f   :  { %137 = vadd.xlane.f32.xlu1 %v108_v13  ;;  %135 = vadd.xlane.f32.xlu0 %v107_v14  ;;  %v94_v13 = vld [vmem:[#allocation2 + $0x78] sm:$0xff] }
  0x53   :  { %141 = vadd.xlane.f32.xlu1 %v110_v15  ;;  %139 = vadd.xlane.f32.xlu0 %v109_v16  ;;  %v93_v16 = vld [vmem:[#allocation2 + $0x70] sm:$0xff] }
  0xc4   :  { %v116_v20 = vpop.xlane.xlu1 %115  ;;  %v112_v21 = vpop.xlane.xlu0 %111 }
  0xc5   :  { %v145_v22 = vadd.f32 %v116_v20, %v81_v18  ;;  %v143_v23 = vadd.f32 %v112_v21, %v79_v19 }
  0xc7   :  { %162 = vst.msk [vmem:[#allocation2 + $0x10] sm:$0xff] %vm62_vm0, %v145_v22  ;;  %160 = vst.msk [vmem:[#allocation2] sm:$0xff] %vm62_vm0, %v143_v23 }
  0xc8   :  { %v118_v26 = vpop.xlane.xlu1 %117  ;;  %v114_v27 = vpop.xlane.xlu0 %113 }
  0xc9   :  { %v146_v28 = vadd.f32 %v118_v26, %v82_v24  ;;  %v144_v29 = vadd.f32 %v114_v27, %v80_v25 }
  0xcb   :  { %163 = vst.msk [vmem:[#allocation2 + $0x18] sm:$0xff] %vm62_vm0, %v146_v28  ;;  %161 = vst.msk [vmem:[#allocation2 + $0x8] sm:$0xff] %vm62_vm0, %v144_v29 }
  0xcc   :  { %v122_v32 = vpop.xlane.xlu1 %121  ;;  %v120_v33 = vpop.xlane.xlu0 %119 }
  0xcd   :  { %v148_v34 = vadd.f32 %v122_v32, %v84_v30  ;;  %v147_v36 = vadd.f32 %v120_v33, %v83_v31 }
  0xce   :  { %v179_v38 = vld [vmem:[#allocation2] sm:$0xff]  ;;  %v181_v39 = vld [vmem:[#allocation2 + $0x10] sm:$0xff] }
  0xcf   :  { %165 = vst.msk [vmem:[#allocation2 + $0x28] sm:$0xff] %vm62_vm0, %v148_v34  ;;  %164 = vst.msk [vmem:[#allocation2 + $0x20] sm:$0xff] %vm62_vm0, %v147_v36  ;;  %v195_v40 = vadd.f32 1.0, %v179_v38  ;;  %v197_v41 = vadd.f32 1.0, %v181_v39 }
  0xd0   :  { %v126_v42 = vpop.xlane.xlu1 %125  ;;  %v124_v43 = vpop.xlane.xlu0 %123 }
  0xd1   :  { %v150_v44 = vadd.f32 %v126_v42, %v86_v35  ;;  %v149_v46 = vadd.f32 %v124_v43, %v85_v37  ;;  %403 = vrsqrt.f32 %v195_v40 }
  0xd2   :  { %v180_v47 = vld [vmem:[#allocation2 + $0x8] sm:$0xff]  ;;  %405 = vrsqrt.f32 %v197_v41  ;;  %v182_v49 = vld [vmem:[#allocation2 + $0x18] sm:$0xff] }
  0xd3   :  { %167 = vst.msk [vmem:[#allocation2 + $0x38] sm:$0xff] %vm62_vm0, %v150_v44  ;;  %166 = vst.msk [vmem:[#allocation2 + $0x30] sm:$0xff] %vm62_vm0, %v149_v46  ;;  %v196_v50 = vadd.f32 1.0, %v180_v47  ;;  %v198_v51 = vadd.f32 1.0, %v182_v49 }
  0xd4   :  { %v130_v52 = vpop.xlane.xlu1 %129  ;;  %v128_v53 = vpop.xlane.xlu0 %127 }
  0xd5   :  { %v152_v54 = vadd.f32 %v130_v52, %v88_v45  ;;  %407 = vrsqrt.f32 %v196_v50  ;;  %v151_v56 = vadd.f32 %v128_v53, %v87_v48  ;;  %v243_v50 = vld [vmem:[#allocation6] sm:$0xff]  ;;  %v244_v53 = vld [vmem:[#allocation6 + $0x8] sm:$0xff] }
  0xd6   :  { %409 = vrsqrt.f32 %v198_v51  ;;  %v183_v58 = vld [vmem:[#allocation2 + $0x20] sm:$0xff]  ;;  %v184_v59 = vld [vmem:[#allocation2 + $0x28] sm:$0xff] }
  0xd7   :  { %169 = vst.msk [vmem:[#allocation2 + $0x48] sm:$0xff] %vm62_vm0, %v152_v54  ;;  %168 = vst.msk [vmem:[#allocation2 + $0x40] sm:$0xff] %vm62_vm0, %v151_v56  ;;  %v199_v60 = vadd.f32 1.0, %v183_v58  ;;  %v200_v61 = vadd.f32 1.0, %v184_v59  ;;  %v245_v56 = vld [vmem:[#allocation6 + $0x10] sm:$0xff]  ;;  %v246_v59 = vld [vmem:[#allocation6 + $0x18] sm:$0xff] }
  0xd8   :  { %v134_v62 = vpop.xlane.xlu1 %133  ;;  %v132_v63 = vpop.xlane.xlu0 %131 }
  0xd9   :  { %v154_v0 = vadd.f32 %v134_v62, %v90_v55  ;;  %v153_v2 = vadd.f32 %v132_v63, %v89_v57  ;;  %411 = vrsqrt.f32 %v199_v60  ;;  %v247_v62 = vld [vmem:[#allocation6 + $0x20] sm:$0xff]  ;;  %v252_v63 = vld [vmem:[#allocation6 + $0x48] sm:$0xff] }
  0xda   :  { %413 = vrsqrt.f32 %v200_v61  ;;  %v185_v4 = vld [vmem:[#allocation2 + $0x30] sm:$0xff]  ;;  %v186_v5 = vld [vmem:[#allocation2 + $0x38] sm:$0xff] }
  0xdb   :  { %v404_v6 = vpop.eup %403  ;;  %171 = vst.msk [vmem:[#allocation2 + $0x58] sm:$0xff] %vm62_vm0, %v154_v0  ;;  %170 = vst.msk [vmem:[#allocation2 + $0x50] sm:$0xff] %vm62_vm0, %v153_v2  ;;  %v201_v7 = vadd.f32 1.0, %v185_v4  ;;  %v202_v8 = vadd.f32 1.0, %v186_v5  ;;  %v248_v4 = vld [vmem:[#allocation6 + $0x28] sm:$0xff]  ;;  %v254_v5 = vld [vmem:[#allocation6 + $0x58] sm:$0xff] }
  0xdc   :  { %v406_v9 = vpop.eup %405  ;;  %v138_v10 = vpop.xlane.xlu1 %137  ;;  %261 = vperm.xlu0 %401, %v404_v6   ;;  %227 = vst.msk [vmem:[%s728_s3] sm:$0xff] %vm62_vm0, %v404_v6 }
  0xdd   :  { %v136_v11 = vpop.xlane.xlu0 %135  ;;  %v156_v12 = vadd.f32 %v138_v10, %v92_v1  ;;  %229 = vst.msk [vmem:[%s728_s3 + $0x10] sm:$0xff] %vm62_vm0, %v406_v9  ;;  %415 = vrsqrt.f32 %v201_v7  ;;  %v249_v10 = vld [vmem:[#allocation6 + $0x30] sm:$0xff] }
  0xde   :  { %v155_v14 = vadd.f32 %v136_v11, %v91_v3  ;;  %v188_v15 = vld [vmem:[#allocation2 + $0x48] sm:$0xff]  ;;  %417 = vrsqrt.f32 %v202_v8  ;;  %v187_v17 = vld [vmem:[#allocation2 + $0x40] sm:$0xff] }
  0xdf   :  { %v408_v18 = vpop.eup %407  ;;  %173 = vst.msk [vmem:[#allocation2 + $0x68] sm:$0xff] %vm62_vm0, %v156_v12  ;;  %v204_v19 = vadd.f32 1.0, %v188_v15  ;;  %v203_v20 = vadd.f32 1.0, %v187_v17  ;;  %v256_v11 = vld [vmem:[#allocation6 + $0x68] sm:$0xff]  ;;  %v258_v17 = vld [vmem:[#allocation6 + $0x78] sm:$0xff] }
  0xe0   :  { %172 = vst.msk [vmem:[#allocation2 + $0x60] sm:$0xff] %vm62_vm0, %v155_v14  ;;  %v410_v21 = vpop.eup %409  ;;  %v142_v22 = vpop.xlane.xlu1 %141  ;;  %266 = vperm.xlu1 %402, %v408_v18   ;;  %228 = vst.msk [vmem:[%s728_s3 + $0x8] sm:$0xff] %vm62_vm0, %v408_v18 }
  0xe1   :  { %v140_v23 = vpop.xlane.xlu0 %139  ;;  %v158_v24 = vadd.f32 %v142_v22, %v94_v13  ;;  %230 = vst.msk [vmem:[%s728_s3 + $0x18] sm:$0xff] %vm62_vm0, %v410_v21  ;;  %419 = vrsqrt.f32 %v204_v19  ;;  %v251_v22 = vld [vmem:[#allocation6 + $0x40] sm:$0xff] }
  0xe2   :  { %v157_v25 = vadd.f32 %v140_v23, %v93_v16  ;;  %v190_v26 = vld [vmem:[#allocation2 + $0x58] sm:$0xff]  ;;  %421 = vrsqrt.f32 %v203_v20  ;;  %v189_v27 = vld [vmem:[#allocation2 + $0x50] sm:$0xff] }
  0xe3   :  { %v412_v28 = vpop.eup %411  ;;  %175 = vst.msk [vmem:[#allocation2 + $0x78] sm:$0xff] %vm62_vm0, %v158_v24  ;;  %v206_v29 = vadd.f32 1.0, %v190_v26  ;;  %v205_v30 = vadd.f32 1.0, %v189_v27  ;;  %v250_v16 = vld [vmem:[#allocation6 + $0x38] sm:$0xff] }
  0xe4   :  { %174 = vst.msk [vmem:[#allocation2 + $0x70] sm:$0xff] %vm62_vm0, %v157_v25  ;;  %v414_v31 = vpop.eup %413  ;;  %271 = vperm.xlu1 %402, %v406_v9   ;;  %231 = vst.msk [vmem:[%s728_s3 + $0x20] sm:$0xff] %vm62_vm0, %v412_v28  ;;  %v253_v25 = vld [vmem:[#allocation6 + $0x50] sm:$0xff] }
  0xe5   :  { %232 = vst.msk [vmem:[%s728_s3 + $0x28] sm:$0xff] %vm62_vm0, %v414_v31  ;;  %423 = vrsqrt.f32 %v206_v29 }
  0xe6   :  { %v192_v32 = vld [vmem:[#allocation2 + $0x68] sm:$0xff]  ;;  %425 = vrsqrt.f32 %v205_v30 }
  0xe7   :  { %v191_v33 = vld [vmem:[#allocation2 + $0x60] sm:$0xff]  ;;  %v416_v34 = vpop.eup %415  ;;  %v208_v35 = vadd.f32 1.0, %v192_v32 }
  0xe8   :  { %v207_v36 = vadd.f32 1.0, %v191_v33  ;;  %v418_v37 = vpop.eup %417  ;;  %276 = vperm.xlu1 %402, %v410_v21   ;;  %233 = vst.msk [vmem:[%s728_s3 + $0x30] sm:$0xff] %vm62_vm0, %v416_v34 }
  0xe9   :  { %427 = vrsqrt.f32 %v208_v35  ;;  %234 = vst.msk [vmem:[%s728_s3 + $0x38] sm:$0xff] %vm62_vm0, %v418_v37 }
  0xea   :  { %v194_v38 = vld [vmem:[#allocation2 + $0x78] sm:$0xff]  ;;  %429 = vrsqrt.f32 %v207_v36 }
  0xeb   :  { %v193_v39 = vld [vmem:[#allocation2 + $0x70] sm:$0xff]  ;;  %v420_v40 = vpop.eup %419  ;;  %v210_v41 = vadd.f32 1.0, %v194_v38 }
  0xec   :  { %v209_v42 = vadd.f32 1.0, %v193_v39  ;;  %v422_v43 = vpop.eup %421  ;;  %281 = vperm.xlu1 %402, %v412_v28   ;;  %236 = vst.msk [vmem:[%s728_s3 + $0x48] sm:$0xff] %vm62_vm0, %v420_v40  ;;  %306 = vperm.xlu0 %401, %v420_v40   ;;  %v255_v28 = vld [vmem:[#allocation6 + $0x60] sm:$0xff] }
  0xed   :  { %431 = vrsqrt.f32 %v210_v41  ;;  %235 = vst.msk [vmem:[%s728_s3 + $0x40] sm:$0xff] %vm62_vm0, %v422_v43 }
  0xee   :  { %433 = vrsqrt.f32 %v209_v42 }
  0xef   :  { %v424_v44 = vpop.eup %423 }
  0xf0   :  { %v426_v45 = vpop.eup %425  ;;  %286 = vperm.xlu1 %402, %v414_v31   ;;  %238 = vst.msk [vmem:[%s728_s3 + $0x58] sm:$0xff] %vm62_vm0, %v424_v44  ;;  %316 = vperm.xlu0 %401, %v424_v44   ;;  %v257_v31 = vld [vmem:[#allocation6 + $0x70] sm:$0xff] }
  0xf1   :  { %237 = vst.msk [vmem:[%s728_s3 + $0x50] sm:$0xff] %vm62_vm0, %v426_v45 }
  0xf3   :  { %v428_v46 = vpop.eup %427 }
  0xf4   :  { %v430_v47 = vpop.eup %429  ;;  %291 = vperm.xlu1 %402, %v416_v34   ;;  %240 = vst.msk [vmem:[%s728_s3 + $0x68] sm:$0xff] %vm62_vm0, %v428_v46  ;;  %326 = vperm.xlu0 %401, %v428_v46  }
  0xf5   :  { %239 = vst.msk [vmem:[%s728_s3 + $0x60] sm:$0xff] %vm62_vm0, %v430_v47 }
  0xf7   :  { %v432_v48 = vpop.eup %431 }
  0xf8   :  { %v434_v49 = vpop.eup %433  ;;  %296 = vperm.xlu1 %402, %v418_v37   ;;  %242 = vst.msk [vmem:[%s728_s3 + $0x78] sm:$0xff] %vm62_vm0, %v432_v48  ;;  %336 = vperm.xlu0 %401, %v432_v48  }
  0xf9   :  { %241 = vst.msk [vmem:[%s728_s3 + $0x70] sm:$0xff] %vm62_vm0, %v434_v49  ;;  %s536_s3 = smov [#allocation9]  }
  0xfa   :  { %s378_s5 = sshll.u32 %s536_s3, 4  ;;  %s379_s5 = int_to_ptr.vmem [resolvable:$true] %s378_s5 }
  0xfb   :  { %s501_s6 = scalar_lea.vmem %s379_s5, 2048  ;;  %p506_p11 = scmp.lt.s32.totalorder %s379_s5, %s379_s5 }
  0xfc   :  { %301 = vperm.xlu1 %402, %v422_v43   ;;  %p502_p10 = scmp.ne.s32.totalorder %s379_s5, %s501_s6  ;;  %p507_p12 = scmp.lt.s32.totalorder %s501_s6, %s501_s6 }
  0xfe   :  { %p508_p13 = por %p507_p12, %p506_p11 }
 0x100   :  { %311 = vperm.xlu1 %402, %v426_v45   ;;  %p509_p0 = pnand %p508_p13, %p502_p10 }
 0x104   :  { %321 = vperm.xlu1 %402, %v430_v47  }
 0x108   :  { %331 = vperm.xlu1 %402, %v434_v49  }
 0x15b   :  { %v262_v51 = vpop.permute.xlu0 %261 }
 0x15c   :  { %v339_v52 = vmul.f32 %v262_v51, %v243_v50 }
 0x15e   :  { %355 = vst [vmem:[#allocation9] sm:$0xff] %v339_v52 }
 0x15f   :  { %v267_v54 = vpop.permute.xlu1 %266 }
 0x160   :  { %v340_v55 = vmul.f32 %v267_v54, %v244_v53 }
 0x162   :  { %356 = vst [vmem:[#allocation9 + $0x8] sm:$0xff] %v340_v55 }
 0x163   :  { %v272_v57 = vpop.permute.xlu1 %271 }
 0x164   :  { %v341_v58 = vmul.f32 %v272_v57, %v245_v56 }
 0x166   :  { %357 = vst [vmem:[#allocation9 + $0x10] sm:$0xff] %v341_v58 }
 0x167   :  { %v277_v60 = vpop.permute.xlu1 %276 }
 0x168   :  { %v342_v61 = vmul.f32 %v277_v60, %v246_v59 }
 0x16a   :  { %358 = vst [vmem:[#allocation9 + $0x18] sm:$0xff] %v342_v61 }
 0x16b   :  { %v282_v0 = vpop.permute.xlu1 %281  ;;  %v307_v1 = vpop.permute.xlu0 %306 }
 0x16c   :  { %v343_v2 = vmul.f32 %v282_v0, %v247_v62  ;;  %v348_v3 = vmul.f32 %v307_v1, %v252_v63 }
 0x16e   :  { %359 = vst [vmem:[#allocation9 + $0x20] sm:$0xff] %v343_v2  ;;  %364 = vst [vmem:[#allocation9 + $0x48] sm:$0xff] %v348_v3 }
 0x16f   :  { %v287_v6 = vpop.permute.xlu1 %286  ;;  %v317_v7 = vpop.permute.xlu0 %316 }
 0x170   :  { %v344_v8 = vmul.f32 %v287_v6, %v248_v4  ;;  %v350_v9 = vmul.f32 %v317_v7, %v254_v5 }
 0x172   :  { %360 = vst [vmem:[#allocation9 + $0x28] sm:$0xff] %v344_v8  ;;  %366 = vst [vmem:[#allocation9 + $0x58] sm:$0xff] %v350_v9 }
 0x173   :  { %v292_v12 = vpop.permute.xlu1 %291  ;;  %v327_v13 = vpop.permute.xlu0 %326 }
 0x174   :  { %v345_v14 = vmul.f32 %v292_v12, %v249_v10  ;;  %v352_v15 = vmul.f32 %v327_v13, %v256_v11 }
 0x176   :  { %361 = vst [vmem:[#allocation9 + $0x30] sm:$0xff] %v345_v14  ;;  %368 = vst [vmem:[#allocation9 + $0x68] sm:$0xff] %v352_v15 }
 0x177   :  { %v297_v18 = vpop.permute.xlu1 %296  ;;  %v337_v19 = vpop.permute.xlu0 %336 }
 0x178   :  { %v346_v20 = vmul.f32 %v297_v18, %v250_v16  ;;  %v354_v21 = vmul.f32 %v337_v19, %v258_v17 }
 0x17a   :  { %362 = vst [vmem:[#allocation9 + $0x38] sm:$0xff] %v346_v20  ;;  %370 = vst [vmem:[#allocation9 + $0x78] sm:$0xff] %v354_v21 }
 0x17b   :  { %v302_v23 = vpop.permute.xlu1 %301 }
 0x17c   :  { %v347_v24 = vmul.f32 %v302_v23, %v251_v22 }
 0x17e   :  { %363 = vst [vmem:[#allocation9 + $0x40] sm:$0xff] %v347_v24 }
 0x17f   :  { %v312_v26 = vpop.permute.xlu1 %311 }
 0x180   :  { %v349_v27 = vmul.f32 %v312_v26, %v253_v25 }
 0x182   :  { %365 = vst [vmem:[#allocation9 + $0x50] sm:$0xff] %v349_v27 }
 0x183   :  { %v322_v29 = vpop.permute.xlu1 %321 }
 0x184   :  { %v351_v30 = vmul.f32 %v322_v29, %v255_v28 }
 0x186   :  { %367 = vst [vmem:[#allocation9 + $0x60] sm:$0xff] %v351_v30 }
 0x187   :  { %v332_v32 = vpop.permute.xlu1 %331 }
 0x188   :  { %v353_v33 = vmul.f32 %v332_v32, %v257_v31 }
 0x18a   :  { %369 = vst [vmem:[#allocation9 + $0x70] sm:$0xff] %v353_v33 }
 0x18b   :  { %512 = shalt.err (!%p509_p0)
}
 0x18c   :  { %s513_s9 = scalar_lea.hbm %s729_s4, 2048 }
 0x18d   :  { %p514_p1 = scmp.ne.s32.totalorder %s729_s4, %s513_s9  ;;  %p517_p2 = scmp.lt.u32.totalorder %s513_s9, %s729_s4 }
 0x18f   :  { %p519_p3 = pnand %p517_p2, %p514_p1 }
 0x191   :  { %522 = shalt.err (!%p519_p3)
}
 0x192   :  { %384 = dma.vmem_to_hbm [thread:$0]  %s379_s5, 2048, %s729_s4, [#allocation5], %s531_s27, %s531_s27, %s532_s28  }
 0x193   :  { %527 = dma.done.wait [#allocation5], 2048  }
 0x194   :  { %528 = vsyncadd [#allocation5], 4294965248 }
 0x195   :  { %390 = vsyncpa [#allocation4], 1 }
 0x196   :  { %391 = vsyncpa [#allocation7], 1 }
 0x197   :  { %392 = vsyncpa [#allocation5], 1 }

</bundles_post_ra>
